<compile_context>
chip_gen: v7x
topology: tpu7x:2x2x1
jax: 0.10.0
libtpu: 0.0.40
codegen_flags: <defaults>
</compile_context>

<pallas_src>
import functools

import jax
import jax.numpy as jnp
from jax.experimental import pallas as pl
from jax.experimental.pallas import tpu as pltpu


def _round_up(x, m):
    return ((x + m - 1) // m) * m


def _vmem_cap_bytes():
    try:
        return int(pltpu.get_tpu_info().vmem_capacity_bytes)
    except Exception:
        return 64 * 1024 * 1024          # v7x per-TC VMEM: safe lower bound


def _vmem_limit_bytes(footprint):
    # Never request the full physical VMEM: size the request from the real
    # block/scratch footprint plus headroom for Mosaic internal scratch.
    return int(min(max(2 * footprint, 32 * 1024 * 1024),
                   int(_vmem_cap_bytes() * 0.85)))


def _attn_footprint_bytes(tq, tk, D, x_bytes, w_bytes, cd_bytes, out_bytes):
    """VMEM working set of the attention kernel (weights counted x2 as a
    conservative bound even when single-buffered)."""
    return (2 * tq * D * x_bytes          # x1 blocks (double-buffered)
            + 2 * D * D * w_bytes         # Wq
            + 2 * D * w_bytes             # bq
            + 2 * 2 * tk * D * cd_bytes   # K and V blocks
            + 2 * tq * D * out_bytes      # out blocks
            + tq * D * cd_bytes           # q scratch
            + 2 * tq * 4                  # m, l scratch
            + 4 * tq * D)                 # f32 output accumulator


def _kv_footprint_bytes(tk, D, x_bytes, w_bytes, cd_bytes):
    return (2 * tk * D * x_bytes          # x2 blocks
            + 4 * D * D * w_bytes         # Wk, Wv
            + 4 * D * w_bytes             # bk, bv
            + 4 * tk * D * cd_bytes)      # K, V output blocks


# --------------------------------------------------------------------------
# Kernel 1: K/V projection, hoisted out of the flash loop (review item 1).
# --------------------------------------------------------------------------
def _kv_proj_kernel(x2_ref, wk_ref, bk_ref, wv_ref, bv_ref, k_ref, v_ref, *,
                    kv_len, block_k, need_mask, compute_dtype):
    x2 = x2_ref[0].astype(compute_dtype)           # cast in-kernel, not in HBM
    k = jnp.dot(x2, wk_ref[...].astype(compute_dtype),
                preferred_element_type=jnp.float32)
    k = k + bk_ref[...].astype(jnp.float32)
    v = jnp.dot(x2, wv_ref[...].astype(compute_dtype),
                preferred_element_type=jnp.float32)
    v = v + bv_ref[...].astype(jnp.float32)
    if need_mask:                                   # static: N2 % tk != 0 only
        # The last key tile reads past the end of x2 (partial block -> stale
        # VMEM); zero those rows so the attention kernel never folds garbage
        # (possibly NaN/Inf) into the PV matmul.
        row = (pl.program_id(1) * block_k
               + jax.lax.broadcasted_iota(jnp.int32, k.shape, 0))
        valid = row < kv_len
        k = jnp.where(valid, k, 0.0)
        v = jnp.where(valid, v, 0.0)
    k_ref[0] = k.astype(k_ref.dtype)
    v_ref[0] = v.astype(v_ref.dtype)


def _project_kv(x2, wk, bk, wv, bv, *, tk, n2_pad, compute_dtype, weight_mode):
    B, N2, D = x2.shape
    need_mask = n2_pad != N2
    kernel = functools.partial(_kv_proj_kernel, kv_len=N2, block_k=tk,
                               need_mask=need_mask, compute_dtype=compute_dtype)
    cd_b = jnp.dtype(compute_dtype).itemsize
    footprint = _kv_footprint_bytes(tk, D, x2.dtype.itemsize,
                                    wk.dtype.itemsize, cd_b)

    def wspec(shape):
        # Constant index map -> no benefit from double buffering.
        return pl.BlockSpec(shape, lambda b, ki: (0, 0),
                            pipeline_mode=weight_mode)

    kv_spec = pl.BlockSpec((1, tk, D), lambda b, ki: (b, ki, 0))
    return pl.pallas_call(
        kernel,
        out_shape=(jax.ShapeDtypeStruct((B, n2_pad, D), compute_dtype),
                   jax.ShapeDtypeStruct((B, n2_pad, D), compute_dtype)),
        grid_spec=pltpu.PrefetchScalarGridSpec(
            num_scalar_prefetch=0,
            grid=(B, n2_pad // tk),
            in_specs=[
                pl.BlockSpec((1, tk, D), lambda b, ki: (b, ki, 0)),   # x2
                wspec((D, D)), wspec((1, D)),                         # Wk, bk
                wspec((D, D)), wspec((1, D)),                         # Wv, bv
            ],
            out_specs=(kv_spec, kv_spec),
        ),
        compiler_params=pltpu.CompilerParams(
            dimension_semantics=("parallel", "parallel"),
            vmem_limit_bytes=_vmem_limit_bytes(footprint),
        ),
    )(x2, wk, bk, wv, bv)


# --------------------------------------------------------------------------
# Kernel 2: flash attention (online softmax over key tiles).
# --------------------------------------------------------------------------
def _flash_attn_kernel(x1_ref, wq_ref, bq_ref, k_ref, v_ref, o_ref,
                       q_scr, m_scr, l_scr, acc_scr, *,
                       scale, kv_len, block_k, need_mask, compute_dtype,
                       exp_dtype, recip_approx):
    ki = pl.program_id(2)

    # Per-(batch, query-tile) init: project q once (bias + scale folded in)
    # and reset the online-softmax state.  ki is the innermost grid axis.
    @pl.when(ki == 0)
    def _init():
        x1 = x1_ref[0].astype(compute_dtype)
        q = jnp.dot(x1, wq_ref[...].astype(compute_dtype),
                    preferred_element_type=jnp.float32)
        q = (q + bq_ref[...].astype(jnp.float32)) * scale
        q_scr[...] = q.astype(q_scr.dtype)
        m_scr[...] = jnp.full_like(m_scr, -jnp.inf)
        l_scr[...] = jnp.zeros_like(l_scr)
        acc_scr[...] = jnp.zeros_like(acc_scr)

    k = k_ref[0]
    v = v_ref[0]

    # Scores: contract the last dims of q and k directly (no k.T relayout).
    s = jax.lax.dot_general(q_scr[...], k, (((1,), (1,)), ((), ())),
                            preferred_element_type=jnp.float32)
    if need_mask:  # static: only emitted when N2 is not a multiple of tk
        # Padded key columns (only in the last ki tile) must not leak into the
        # softmax denominator.  Mask value is f32 and bf16-representable.
        col = ki * block_k + jax.lax.broadcasted_iota(jnp.int32, s.shape, 1)
        s = jnp.where(col < kv_len, s, -1e30)

    # Online softmax update (m / l stats stay in f32).
    m_prev = m_scr[...]
    m_new = jnp.maximum(m_prev, jnp.max(s, axis=-1, keepdims=True))
    alpha = jnp.exp(m_prev - m_new)
    p = jnp.exp((s - m_new).astype(exp_dtype))      # optional bf16 EUP path
    l_scr[...] = alpha * l_scr[...] + jnp.sum(p.astype(jnp.float32), axis=-1,
                                              keepdims=True)
    acc_scr[...] = alpha * acc_scr[...] + jnp.dot(
        p.astype(v.dtype), v, preferred_element_type=jnp.float32)
    m_scr[...] = m_new

    @pl.when(ki == pl.num_programs(2) - 1)
    def _finalize():
        inv = pl.reciprocal(l_scr[...], approx=recip_approx)
        o_ref[0] = (acc_scr[...] * inv).astype(o_ref.dtype)


def _flash_attention(x1, k, v, wq, bq, *, tq, tk, kv_len, compute_dtype,
                     exp_dtype, weight_mode, out_dtype, scale):
    B, N1, D = x1.shape
    n2_pad = k.shape[1]
    need_mask = n2_pad != kv_len
    # Exact reciprocal when the caller asked for f32-level accuracy.
    recip_approx = bool(jnp.dtype(compute_dtype) != jnp.dtype(jnp.float32))

    kernel = functools.partial(
        _flash_attn_kernel, scale=scale, kv_len=kv_len, block_k=tk,
        need_mask=need_mask, compute_dtype=compute_dtype, exp_dtype=exp_dtype,
        recip_approx=recip_approx)

    cd_b = jnp.dtype(compute_dtype).itemsize
    footprint = _attn_footprint_bytes(tq, tk, D, x1.dtype.itemsize,
                                      wq.dtype.itemsize, cd_b,
                                      jnp.dtype(out_dtype).itemsize)

    kv_spec = pl.BlockSpec((1, tk, D), lambda b, qi, ki: (b, ki, 0))
    return pl.pallas_call(
        kernel,
        out_shape=jax.ShapeDtypeStruct((B, N1, D), out_dtype),
        grid_spec=pltpu.PrefetchScalarGridSpec(
            num_scalar_prefetch=0,
            grid=(B, pl.cdiv(N1, tq), n2_pad // tk),
            in_specs=[
                pl.BlockSpec((1, tq, D), lambda b, qi, ki: (b, qi, 0)),  # x1
                pl.BlockSpec((D, D), lambda b, qi, ki: (0, 0),
                             pipeline_mode=weight_mode),                 # Wq
                pl.BlockSpec((1, D), lambda b, qi, ki: (0, 0),
                             pipeline_mode=weight_mode),                 # bq
                kv_spec,                                                 # K
                kv_spec,                                                 # V
            ],
            out_specs=pl.BlockSpec((1, tq, D), lambda b, qi, ki: (b, qi, 0)),
            scratch_shapes=[
                pltpu.VMEM((tq, D), compute_dtype),   # q (scaled + biased)
                pltpu.VMEM((tq, 1), jnp.float32),     # running max m
                pltpu.VMEM((tq, 1), jnp.float32),     # running denominator l
                pltpu.VMEM((tq, D), jnp.float32),     # output accumulator
            ],
        ),
        compiler_params=pltpu.CompilerParams(
            dimension_semantics=("parallel", "parallel", "arbitrary"),
            vmem_limit_bytes=_vmem_limit_bytes(footprint),
        ),
    )(x1, wq, bq, k, v)


# --------------------------------------------------------------------------
# Public wrapper (CrossAttention.forward, eval mode).
# --------------------------------------------------------------------------
def cross_attention(x1, x2, wq, bq, wk, bk, wv, bv, *,
                    block_q=512, block_k=512,
                    compute_dtype=jnp.bfloat16,
                    exp_in_compute_dtype=False,
                    single_buffer_weights=True):
    """x1: (B, N1, D) query modality, x2: (B, N2, D) key/value modality.
    Weights are stored already transposed (in, out), so y = x @ W + b; biases
    are (D,) or (1, D).  Returns (B, N1, D) in x1.dtype.

    exp_in_compute_dtype=True runs the softmax exp in bf16 on the EUP (2x
    throughput on v6e/v7x); keep False on v5e or when exp is not the bound slot.
    """
    B, N1, D = x1.shape
    B2, N2, D2 = x2.shape
    assert (B2, D2) == (B, D), "x1/x2 batch and feature dims must match"
    out_dtype = x1.dtype
    scale = float(D) ** (-0.5)

    bq, bk, bv = (jnp.reshape(b, (1, D)) for b in (bq, bk, bv))

    # ---- Tile selection (no wrapper-side padding / casting of any input) ---
    # 512 defaults keep full 256-wide MXU passes on v6e/v7x and amortize the
    # ~0.35us/step pipeline overhead; clamp to the 8-rounded sequence lengths.
    tq = min(block_q, _round_up(N1, 8))
    tk = min(block_k, _round_up(N2, 8))
    # v7x: 2 TensorCores are sharded over the parallel grid axes -- keep at
    # least two (batch x query-tile) work units when the shape allows it.
    if B * ((N1 + tq - 1) // tq) < 2 and N1 >= 16:
        tq = _round_up((N1 + 1) // 2, 8)
    # Shrink tiles if the attention working set would overflow the VMEM budget
    # (mostly relevant for very large D on v7x's 64 MiB VMEM).
    budget = int(_vmem_cap_bytes() * 0.85)
    cd_b = jnp.dtype(compute_dtype).itemsize

    def _fp(tq_, tk_):
        return _attn_footprint_bytes(tq_, tk_, D, x1.dtype.itemsize,
                                     wq.dtype.itemsize, cd_b,
                                     jnp.dtype(out_dtype).itemsize)

    while _fp(tq, tk) > budget and max(tq, tk) > 256:
        if tk >= tq:
            tk = max(256, _round_up(tk // 2, 8))
        else:
            tq = max(256, _round_up(tq // 2, 8))
    n2_pad = _round_up(N2, tk)

    exp_dtype = (compute_dtype
                 if exp_in_compute_dtype
                 and jnp.dtype(compute_dtype) != jnp.dtype(jnp.float32)
                 else jnp.float32)

    def _forward(weight_mode):
        k_proj, v_proj = _project_kv(x2, wk, bk, wv, bv, tk=tk, n2_pad=n2_pad,
                                     compute_dtype=compute_dtype,
                                     weight_mode=weight_mode)
        return _flash_attention(x1, k_proj, v_proj, wq, bq, tq=tq, tk=tk,
                                kv_len=N2, compute_dtype=compute_dtype,
                                exp_dtype=exp_dtype, weight_mode=weight_mode,
                                out_dtype=out_dtype, scale=scale)

    if single_buffer_weights:
        # Weight/bias index maps are constant -> single-buffer them (halves
        # their VMEM residency; matters for large D on v7x).  Fall back to the
        # default double buffering if this JAX build rejects pl.Buffered(1).
        try:
            return _forward(pl.Buffered(1))
        except Exception:
            pass
    return _forward(None)


def cross_attention_ref(x1, x2, wq, bq, wk, bk, wv, bv):
    D = x1.shape[-1]
    scale = float(D) ** (-0.5)
    q = x1 @ wq + bq
    k = x2 @ wk + bk
    v = x2 @ wv + bv
    attn = jax.nn.softmax(jnp.einsum("bqd,bkd->bqk", q, k) * scale, axis=-1)
    return jnp.einsum("bqk,bkd->bqd", attn, v)


if __name__ == "__main__":
    B, N1, N2, D = 2, 24, 40, 32

    key = jax.random.PRNGKey(0)
    ks = jax.random.split(key, 8)
    x1 = jax.random.normal(ks[0], (B, N1, D), dtype=jnp.float32)
    x2 = jax.random.normal(ks[1], (B, N2, D), dtype=jnp.float32)

    # Deterministic parameter init (PyTorch nn.Linear-style uniform bound).
    bound = 1.0 / (D ** 0.5)
    init = lambda k_, shape: jax.random.uniform(k_, shape, jnp.float32,
                                                -bound, bound)
    # Stored already-transposed: (in, out), so linear(x) = x @ W + b.
    wq, bq = init(ks[2], (D, D)), init(ks[3], (1, D))
    wk, bk = init(ks[4], (D, D)), init(ks[5], (1, D))
    wv, bv = init(ks[6], (D, D)), init(ks[7], (1, D))

    ref = cross_attention_ref(x1, x2, wq, bq, wk, bk, wv, bv)

    # f32 path with forced small tiles: exercises the multi-tile online-softmax
    # loop, the ragged last query tile, and the key-padding mask.
    out_f32 = cross_attention(x1, x2, wq, bq, wk, bk, wv, bv,
                              block_q=16, block_k=16,
                              compute_dtype=jnp.float32)
    jax.block_until_ready(out_f32)
    assert out_f32.shape == (B, N1, D)
    assert jnp.allclose(out_f32, ref, atol=1e-2, rtol=1e-2), \
        "f32 mismatch vs reference"

    # Default path: bf16 compute on the MXU with f32 accumulation.
    out_bf16 = cross_attention(x1, x2, wq, bq, wk, bk, wv, bv)
    jax.block_until_ready(out_bf16)
    assert out_bf16.shape == (B, N1, D)
    assert jnp.allclose(out_bf16.astype(jnp.float32), ref,
                        atol=5e-2, rtol=5e-2), "bf16 mismatch vs reference"

    print("KERNEL_OK")
</pallas_src>

<mosaic_0001>
module attributes {stable_mosaic.version = 11 : i64} {
  func.func @_kv_proj_kernel(%arg0: i32, %arg1: i32, %arg2: memref<1x16x32xf32, #tpu.memory_space<vmem>>, %arg3: memref<32x32xf32, #tpu.memory_space<vmem>>, %arg4: memref<1x32xf32, #tpu.memory_space<vmem>>, %arg5: memref<32x32xf32, #tpu.memory_space<vmem>>, %arg6: memref<1x32xf32, #tpu.memory_space<vmem>>, %arg7: memref<1x16x32xf32, #tpu.memory_space<vmem>>, %arg8: memref<1x16x32xf32, #tpu.memory_space<vmem>>) attributes {dimension_semantics = [#tpu.dimension_semantics<parallel>, #tpu.dimension_semantics<parallel>], iteration_bounds = array<i64: 2, 3>, scalar_prefetch = 0 : i64, scratch_operands = 0 : i64, tpu.core_type = #tpu.core_type<tc>, window_params = [{transform_indices = @transform_0, window_bounds = array<i64: 1, 16, 32>}, {pipeline_mode = #tpu.pipeline_mode<synchronous>, transform_indices = @transform_1, window_bounds = array<i64: 32, 32>}, {pipeline_mode = #tpu.pipeline_mode<synchronous>, transform_indices = @transform_2, window_bounds = array<i64: 1, 32>}, {pipeline_mode = #tpu.pipeline_mode<synchronous>, transform_indices = @transform_3, window_bounds = array<i64: 32, 32>}, {pipeline_mode = #tpu.pipeline_mode<synchronous>, transform_indices = @transform_4, window_bounds = array<i64: 1, 32>}, {transform_indices = @transform_5, window_bounds = array<i64: 1, 16, 32>}, {transform_indices = @transform_6, window_bounds = array<i64: 1, 16, 32>}]} {
    %c0 = arith.constant 0 : index
    %c0_0 = arith.constant 0 : index
    %c0_1 = arith.constant 0 : index
    %0 = vector.load %arg2[%c0, %c0_0, %c0_1] : memref<1x16x32xf32, #tpu.memory_space<vmem>>, vector<1x16x32xf32>
    %1 = vector.shape_cast %0 : vector<1x16x32xf32> to vector<16x32xf32>
    %c0_2 = arith.constant 0 : index
    %c0_3 = arith.constant 0 : index
    %2 = vector.load %arg3[%c0_2, %c0_3] : memref<32x32xf32, #tpu.memory_space<vmem>>, vector<32x32xf32>
    %cst = arith.constant dense<0.000000e+00> : vector<16x32xf32>
    %3 = tpu.matmul %1, %2, %cst {dimension_numbers = #tpu.dot_dimension_numbers<[1], [0], [0], [1], [0, 0, 1, 1], [], []>} : vector<16x32xf32>, vector<32x32xf32>, vector<16x32xf32> -> vector<16x32xf32>
    %c0_4 = arith.constant 0 : index
    %c0_5 = arith.constant 0 : index
    %4 = vector.load %arg4[%c0_4, %c0_5] : memref<1x32xf32, #tpu.memory_space<vmem>>, vector<1x32xf32>
    %5 = vector.broadcast %4 : vector<1x32xf32> to vector<16x32xf32>
    %6 = arith.addf %3, %5 : vector<16x32xf32>
    %c0_6 = arith.constant 0 : index
    %c0_7 = arith.constant 0 : index
    %7 = vector.load %arg5[%c0_6, %c0_7] : memref<32x32xf32, #tpu.memory_space<vmem>>, vector<32x32xf32>
    %cst_8 = arith.constant dense<0.000000e+00> : vector<16x32xf32>
    %8 = tpu.matmul %1, %7, %cst_8 {dimension_numbers = #tpu.dot_dimension_numbers<[1], [0], [0], [1], [0, 0, 1, 1], [], []>} : vector<16x32xf32>, vector<32x32xf32>, vector<16x32xf32> -> vector<16x32xf32>
    %c0_9 = arith.constant 0 : index
    %c0_10 = arith.constant 0 : index
    %9 = vector.load %arg6[%c0_9, %c0_10] : memref<1x32xf32, #tpu.memory_space<vmem>>, vector<1x32xf32>
    %10 = vector.broadcast %9 : vector<1x32xf32> to vector<16x32xf32>
    %11 = arith.addf %8, %10 : vector<16x32xf32>
    %c16_i32 = arith.constant 16 : i32
    %12 = arith.muli %arg1, %c16_i32 : i32
    %13 = tpu.iota {dimensions = array<i32: 0>} : vector<16x32xi32>
    %14 = vector.broadcast %12 : i32 to vector<16x32xi32>
    %15 = arith.addi %14, %13 : vector<16x32xi32>
    %c40_i32 = arith.constant 40 : i32
    %16 = vector.broadcast %c40_i32 : i32 to vector<16x32xi32>
    %17 = arith.cmpi slt, %15, %16 : vector<16x32xi32>
    %cst_11 = arith.constant 0.000000e+00 : f32
    %18 = vector.broadcast %cst_11 : f32 to vector<16x32xf32>
    %19 = arith.select %17, %6, %18 : vector<16x32xi1>, vector<16x32xf32>
    %cst_12 = arith.constant 0.000000e+00 : f32
    %20 = vector.broadcast %cst_12 : f32 to vector<16x32xf32>
    %21 = arith.select %17, %11, %20 : vector<16x32xi1>, vector<16x32xf32>
    %c0_13 = arith.constant 0 : index
    %c0_14 = arith.constant 0 : index
    %c0_15 = arith.constant 0 : index
    %22 = vector.load %arg7[%c0_13, %c0_14, %c0_15] : memref<1x16x32xf32, #tpu.memory_space<vmem>>, vector<1x16x32xf32>
    %23 = vector.shape_cast %22 : vector<1x16x32xf32> to vector<16x32xf32>
    %24 = vector.shape_cast %19 : vector<16x32xf32> to vector<1x16x32xf32>
    tpu.vector_store %arg7[%c0_13, %c0_14, %c0_15], %24 {strides = array<i32>} : memref<1x16x32xf32, #tpu.memory_space<vmem>>, vector<1x16x32xf32>,
    %c0_16 = arith.constant 0 : index
    %c0_17 = arith.constant 0 : index
    %c0_18 = arith.constant 0 : index
    %25 = vector.load %arg8[%c0_16, %c0_17, %c0_18] : memref<1x16x32xf32, #tpu.memory_space<vmem>>, vector<1x16x32xf32>
    %26 = vector.shape_cast %25 : vector<1x16x32xf32> to vector<16x32xf32>
    %27 = vector.shape_cast %21 : vector<16x32xf32> to vector<1x16x32xf32>
    tpu.vector_store %arg8[%c0_16, %c0_17, %c0_18], %27 {strides = array<i32>} : memref<1x16x32xf32, #tpu.memory_space<vmem>>, vector<1x16x32xf32>,
    return
  }
  func.func @transform_0(%arg0: i32, %arg1: i32) -> (i32, i32, i32) {
    %c0_i32 = arith.constant 0 : i32
    %c0_i32_0 = arith.constant 0 : i32
    return %arg0, %arg1, %c0_i32 : i32, i32, i32
  }
  func.func @transform_1(%arg0: i32, %arg1: i32) -> (i32, i32) {
    %c0_i32 = arith.constant 0 : i32
    %c0_i32_0 = arith.constant 0 : i32
    %c0_i32_1 = arith.constant 0 : i32
    return %c0_i32, %c0_i32_0 : i32, i32
  }
  func.func @transform_2(%arg0: i32, %arg1: i32) -> (i32, i32) {
    %c0_i32 = arith.constant 0 : i32
    %c0_i32_0 = arith.constant 0 : i32
    %c0_i32_1 = arith.constant 0 : i32
    return %c0_i32, %c0_i32_0 : i32, i32
  }
  func.func @transform_3(%arg0: i32, %arg1: i32) -> (i32, i32) {
    %c0_i32 = arith.constant 0 : i32
    %c0_i32_0 = arith.constant 0 : i32
    %c0_i32_1 = arith.constant 0 : i32
    return %c0_i32, %c0_i32_0 : i32, i32
  }
  func.func @transform_4(%arg0: i32, %arg1: i32) -> (i32, i32) {
    %c0_i32 = arith.constant 0 : i32
    %c0_i32_0 = arith.constant 0 : i32
    %c0_i32_1 = arith.constant 0 : i32
    return %c0_i32, %c0_i32_0 : i32, i32
  }
  func.func @transform_5(%arg0: i32, %arg1: i32) -> (i32, i32, i32) {
    %c0_i32 = arith.constant 0 : i32
    %c0_i32_0 = arith.constant 0 : i32
    return %arg0, %arg1, %c0_i32 : i32, i32, i32
  }
  func.func @transform_6(%arg0: i32, %arg1: i32) -> (i32, i32, i32) {
    %c0_i32 = arith.constant 0 : i32
    %c0_i32_0 = arith.constant 0 : i32
    return %arg0, %arg1, %c0_i32 : i32, i32, i32
  }
}

module attributes {stable_mosaic.version = 11 : i64} {
  func.func @_kv_proj_kernel(%arg0: i32, %arg1: i32, %arg2: memref<1x16x32xf32, #tpu.memory_space<vmem>>, %arg3: memref<32x32xf32, #tpu.memory_space<vmem>>, %arg4: memref<1x32xf32, #tpu.memory_space<vmem>>, %arg5: memref<32x32xf32, #tpu.memory_space<vmem>>, %arg6: memref<1x32xf32, #tpu.memory_space<vmem>>, %arg7: memref<1x16x32xf32, #tpu.memory_space<vmem>>, %arg8: memref<1x16x32xf32, #tpu.memory_space<vmem>>) attributes {dimension_semantics = [#tpu.dimension_semantics<parallel>, #tpu.dimension_semantics<parallel>], iteration_bounds = array<i64: 2, 3>, scalar_prefetch = 0 : i64, scratch_operands = 0 : i64, tpu.core_type = #tpu.core_type<tc>, window_params = [{transform_indices = @transform_0, window_bounds = array<i64: 1, 16, 32>}, {pipeline_mode = #tpu.pipeline_mode<synchronous>, transform_indices = @transform_1, window_bounds = array<i64: 32, 32>}, {pipeline_mode = #tpu.pipeline_mode<synchronous>, transform_indices = @transform_2, window_bounds = array<i64: 1, 32>}, {pipeline_mode = #tpu.pipeline_mode<synchronous>, transform_indices = @transform_3, window_bounds = array<i64: 32, 32>}, {pipeline_mode = #tpu.pipeline_mode<synchronous>, transform_indices = @transform_4, window_bounds = array<i64: 1, 32>}, {transform_indices = @transform_5, window_bounds = array<i64: 1, 16, 32>}, {transform_indices = @transform_6, window_bounds = array<i64: 1, 16, 32>}]} {
    %c0 = arith.constant 0 : index
    %c0_0 = arith.constant 0 : index
    %c0_1 = arith.constant 0 : index
    %0 = vector.load %arg2[%c0, %c0_0, %c0_1] : memref<1x16x32xf32, #tpu.memory_space<vmem>>, vector<1x16x32xf32>
    %1 = vector.shape_cast %0 : vector<1x16x32xf32> to vector<16x32xf32>
    %c0_2 = arith.constant 0 : index
    %c0_3 = arith.constant 0 : index
    %2 = vector.load %arg3[%c0_2, %c0_3] : memref<32x32xf32, #tpu.memory_space<vmem>>, vector<32x32xf32>
    %cst = arith.constant dense<0.000000e+00> : vector<16x32xf32>
    %3 = tpu.matmul %1, %2, %cst {dimension_numbers = #tpu.dot_dimension_numbers<[1], [0], [0], [1], [0, 0, 1, 1], [], []>} : vector<16x32xf32>, vector<32x32xf32>, vector<16x32xf32> -> vector<16x32xf32>
    %c0_4 = arith.constant 0 : index
    %c0_5 = arith.constant 0 : index
    %4 = vector.load %arg4[%c0_4, %c0_5] : memref<1x32xf32, #tpu.memory_space<vmem>>, vector<1x32xf32>
    %5 = vector.broadcast %4 : vector<1x32xf32> to vector<16x32xf32>
    %6 = arith.addf %3, %5 : vector<16x32xf32>
    %c0_6 = arith.constant 0 : index
    %c0_7 = arith.constant 0 : index
    %7 = vector.load %arg5[%c0_6, %c0_7] : memref<32x32xf32, #tpu.memory_space<vmem>>, vector<32x32xf32>
    %cst_8 = arith.constant dense<0.000000e+00> : vector<16x32xf32>
    %8 = tpu.matmul %1, %7, %cst_8 {dimension_numbers = #tpu.dot_dimension_numbers<[1], [0], [0], [1], [0, 0, 1, 1], [], []>} : vector<16x32xf32>, vector<32x32xf32>, vector<16x32xf32> -> vector<16x32xf32>
    %c0_9 = arith.constant 0 : index
    %c0_10 = arith.constant 0 : index
    %9 = vector.load %arg6[%c0_9, %c0_10] : memref<1x32xf32, #tpu.memory_space<vmem>>, vector<1x32xf32>
    %10 = vector.broadcast %9 : vector<1x32xf32> to vector<16x32xf32>
    %11 = arith.addf %8, %10 : vector<16x32xf32>
    %c16_i32 = arith.constant 16 : i32
    %12 = arith.muli %arg1, %c16_i32 : i32
    %13 = tpu.iota {dimensions = array<i32: 0>} : vector<16x32xi32>
    %14 = vector.broadcast %12 : i32 to vector<16x32xi32>
    %15 = arith.addi %14, %13 : vector<16x32xi32>
    %c40_i32 = arith.constant 40 : i32
    %16 = vector.broadcast %c40_i32 : i32 to vector<16x32xi32>
    %17 = arith.cmpi slt, %15, %16 : vector<16x32xi32>
    %cst_11 = arith.constant 0.000000e+00 : f32
    %18 = vector.broadcast %cst_11 : f32 to vector<16x32xf32>
    %19 = arith.select %17, %6, %18 : vector<16x32xi1>, vector<16x32xf32>
    %cst_12 = arith.constant 0.000000e+00 : f32
    %20 = vector.broadcast %cst_12 : f32 to vector<16x32xf32>
    %21 = arith.select %17, %11, %20 : vector<16x32xi1>, vector<16x32xf32>
    %c0_13 = arith.constant 0 : index
    %c0_14 = arith.constant 0 : index
    %c0_15 = arith.constant 0 : index
    %22 = vector.load %arg7[%c0_13, %c0_14, %c0_15] : memref<1x16x32xf32, #tpu.memory_space<vmem>>, vector<1x16x32xf32>
    %23 = vector.shape_cast %22 : vector<1x16x32xf32> to vector<16x32xf32>
    %24 = vector.shape_cast %19 : vector<16x32xf32> to vector<1x16x32xf32>
    tpu.vector_store %arg7[%c0_13, %c0_14, %c0_15], %24 {strides = array<i32>} : memref<1x16x32xf32, #tpu.memory_space<vmem>>, vector<1x16x32xf32>,
    %c0_16 = arith.constant 0 : index
    %c0_17 = arith.constant 0 : index
    %c0_18 = arith.constant 0 : index
    %25 = vector.load %arg8[%c0_16, %c0_17, %c0_18] : memref<1x16x32xf32, #tpu.memory_space<vmem>>, vector<1x16x32xf32>
    %26 = vector.shape_cast %25 : vector<1x16x32xf32> to vector<16x32xf32>
    %27 = vector.shape_cast %21 : vector<16x32xf32> to vector<1x16x32xf32>
    tpu.vector_store %arg8[%c0_16, %c0_17, %c0_18], %27 {strides = array<i32>} : memref<1x16x32xf32, #tpu.memory_space<vmem>>, vector<1x16x32xf32>,
    return
  }
  func.func @transform_0(%arg0: i32, %arg1: i32) -> (i32, i32, i32) {
    %c0_i32 = arith.constant 0 : i32
    %c0_i32_0 = arith.constant 0 : i32
    return %arg0, %arg1, %c0_i32 : i32, i32, i32
  }
  func.func @transform_1(%arg0: i32, %arg1: i32) -> (i32, i32) {
    %c0_i32 = arith.constant 0 : i32
    %c0_i32_0 = arith.constant 0 : i32
    %c0_i32_1 = arith.constant 0 : i32
    return %c0_i32, %c0_i32_0 : i32, i32
  }
  func.func @transform_2(%arg0: i32, %arg1: i32) -> (i32, i32) {
    %c0_i32 = arith.constant 0 : i32
    %c0_i32_0 = arith.constant 0 : i32
    %c0_i32_1 = arith.constant 0 : i32
    return %c0_i32, %c0_i32_0 : i32, i32
  }
  func.func @transform_3(%arg0: i32, %arg1: i32) -> (i32, i32) {
    %c0_i32 = arith.constant 0 : i32
    %c0_i32_0 = arith.constant 0 : i32
    %c0_i32_1 = arith.constant 0 : i32
    return %c0_i32, %c0_i32_0 : i32, i32
  }
  func.func @transform_4(%arg0: i32, %arg1: i32) -> (i32, i32) {
    %c0_i32 = arith.constant 0 : i32
    %c0_i32_0 = arith.constant 0 : i32
    %c0_i32_1 = arith.constant 0 : i32
    return %c0_i32, %c0_i32_0 : i32, i32
  }
  func.func @transform_5(%arg0: i32, %arg1: i32) -> (i32, i32, i32) {
    %c0_i32 = arith.constant 0 : i32
    %c0_i32_0 = arith.constant 0 : i32
    return %arg0, %arg1, %c0_i32 : i32, i32, i32
  }
  func.func @transform_6(%arg0: i32, %arg1: i32) -> (i32, i32, i32) {
    %c0_i32 = arith.constant 0 : i32
    %c0_i32_0 = arith.constant 0 : i32
    return %arg0, %arg1, %c0_i32 : i32, i32, i32
  }
}

</mosaic_0001>

<bundles_post_ra>
// kernel: tpu_custom_call.1
= control target key start
LH: loop header
LB: loop body
LE: loop exit
PB: predicated region body
PF: predicated region fallthrough
CT: control target
= control target key end

     0   :  { %s860_s21 = smov 0   ;;  %s862_s22 = smov 0   ;;  %s962_s0 = inlined_call_operand.vmem [shape: f32[2,40,32], index: 0, kind: input, shape index: {}]   ;;  %s963_s1 = inlined_call_operand.vmem [shape: f32[32,32], index: 1, kind: input, shape index: {}]   ;;  %s964_s2 = inlined_call_operand.vmem [shape: f32[1,32], index: 2, kind: input, shape index: {}]   ;;  %s965_s3 = inlined_call_operand.vmem [shape: f32[32,32], index: 3, kind: input, shape index: {}]   ;;  %s966_s4 = inlined_call_operand.vmem [shape: f32[1,32], index: 4, kind: input, shape index: {}]   ;;  %s967_s5 = inlined_call_operand.vmem [shape: f32[2,48,32], index: 5, kind: output, shape index: {0}]   ;;  %s968_s6 = inlined_call_operand.vmem [shape: f32[2,48,32], index: 6, kind: output, shape index: {1}]  }
   0x1   :  { %s864_s23 = smov 0   ;;  %s866_s24 = smov 0  }
   0x2   :  { %s868_s25 = smov 0  }
   0x3 LB: > { %s26_s26 = sadd.s32 1, %s815_s23  ;;  %s29_s27 = sadd.s32 1, %s819_s24  ;;  %s823_s25 = sphi %s868_s25, %s17_s25   ;;  %s819_s24 = sphi %s866_s24, %s972_s24   ;;  %s815_s23 = sphi %s864_s23, %s971_s23   ;;  %s811_s22 = sphi %s862_s22, %s970_s22   ;;  %s807_s21 = sphi %s860_s21, %s969_s21  }
   0x4   : > { %p27_p0 = scmp.ge.s32.totalorder %s26_s26, 3  ;;  %p677_p1 = scmp.ge.s32.totalorder %s823_s25, 1 }
   0x5   : > { %p246_p2 = scmp.lt.s32.totalorder %s823_s25, 7 }
   0x6   : > { %s974_s26 = smov (%p27_p0, %s26_s26), 0  ;;  %s976_s27 = smov (!%p27_p0, %s29_s27), %s819_s24 }
   0x7   : > { %p247_p3 = pnand %p677_p1, %p246_p2  ;;  %p31_p4 = scmp.ge.s32.totalorder %s976_s27, 2 }
   0x8   : > { %v337_v0 = vld [vmem:[%s963_s1] sm:$0xff] (!%p247_p3)  ;;  %v338_v1 = vld [vmem:[%s963_s1 + $0x8] sm:$0xff] (!%p247_p3)  ;;  %s902_s10 = sshll.u32 (!%p247_p3), %s807_s21, 1  ;;  %p302_p5 = scmp.lt.s32.totalorder (!%p247_p3), %s811_s22, 1  ;;  %v339_v5 = vld [vmem:[%s963_s1 + $0x10] sm:$0xff] (!%p247_p3)  ;;  %vm348_vm0 = vcmask (!%p247_p3), 261120   ;;  %v517_v14 = vlaneseq (!%p247_p3) }
   0x9   : > { %s978_s27 = smov (%p31_p4, %s976_s27), 0  ;;  %250 = sbr.rel (%p247_p3) target bundleno = 242 (0xf2), region = 40 }
   0xa   : > { %v430_v2 = vld [vmem:[%s965_s3] sm:$0xff] (!%p247_p3)  ;;  %v727_v3 = vpack.c.bf16 (!%p247_p3), %v338_v1, %v337_v0  ;;  %v431_v4 = vld [vmem:[%s965_s3 + $0x8] sm:$0xff] (!%p247_p3)  ;;  %v340_v6 = vld [vmem:[%s963_s1 + $0x18] sm:$0xff] (!%p247_p3)  ;;  %p304_p6 = scmp.lt.s32.totalorder (!%p247_p3), %s902_s10, 4  ;;  %p318_p7 = scmp.lt.s32.totalorder (!%p247_p3), %s902_s10, 5  ;;  %v518_v15 = vshrl.u32 (!%p247_p3), %v517_v14, 7 }
   0xb   : > { %v735_v7 = vpack.c.bf16 (!%p247_p3), %v431_v4, %v430_v2  ;;  %v731_v8 = vpack.c.bf16 (!%p247_p3), %v340_v6, %v339_v5  ;;  %v432_v9 = vld [vmem:[%s965_s3 + $0x10] sm:$0xff] (!%p247_p3)  ;;  %v433_v10 = vld [vmem:[%s965_s3 + $0x18] sm:$0xff] (!%p247_p3)  ;;  %v684_v20 = vld [vmem:[%s964_s2] ss:$0 sm:$0xff] (!%p247_p3) }
   0xc   : > { %728 = vmatprep.subr.bf16.mxu0 (!%p247_p3), %v727_v3  ;;  %v739_v11 = vpack.c.bf16 (!%p247_p3), %v433_v10, %v432_v9  ;;  %v519_v16 = vadd.s32 (!%p247_p3), 8, %v518_v15  ;;  %v687_v21 = vld [vmem:[%s966_s4] ss:$0 sm:$0xff] (!%p247_p3) }
   0xd   : > { %736 = vmatprep.subr.bf16.mxu1 (!%p247_p3), %v735_v7  ;;  %730 = vmatpush3.bf16.msra.mxu0 (!%p247_p3), %v727_v3 }
   0xe   : > { %738 = vmatpush3.bf16.msra.mxu1 (!%p247_p3), %v735_v7  ;;  %732 = vmatprep.subr.bf16.mxu0 (!%p247_p3), %v731_v8 }
   0xf   : > { %740 = vmatprep.subr.bf16.mxu1 (!%p247_p3), %v739_v11 }
  0x10   : > { %s980_s22 = smov (!%p302_p5, %s811_s22), 1 }
  0x11   : > { %s305_s28 = scalar_select %p304_p6, %s902_s10, 4  ;;  %734 = vmatpush3.bf16.msra.mxu0 %v731_v8 }
  0x12   : > { %s743_s29 = smul.u32 5, %s980_s22  ;;  %742 = vmatpush3.bf16.msra.mxu1 %v739_v11  ;;  %s982_s10 = smov (!%p318_p7, %s902_s10), 5 }
  0x13   : > { %s744_s8 = smul.u32 6, %s980_s22  ;;  %s690_s22 = sshll.u32 %s807_s21, 4 }
  0x14   : > { %s307_s30 = sadd.s32 %s743_s29, %s305_s28  ;;  %v520_v17 = vstv %s690_s22 }
  0x15   : > { %s679_s7 = sshll.u32 %s307_s30, 3  ;;  %s321_s13 = sadd.s32 %s744_s8, %s982_s10  ;;  %v522_v18 = vadd.s32 %v520_v17, %v519_v16  ;;  %v521_v19 = vadd.s32 %v520_v17, %v518_v15 }
  0x16   : > { %s309_s12 = scalar_lea.vmem %s962_s0, %s679_s7  ;;  %s681_s14 = sshll.u32 %s321_s13, 3 }
  0x17   : > { %v335_v12 = vld [vmem:[%s309_s12] sm:$0xff]  ;;  %v336_v13 = vld [vmem:[%s309_s12 + $0x8] sm:$0xff]  ;;  %vm524_vm1 = vcmp.lt.s32.totalorder %v522_v18, 40  ;;  %s323_s20 = scalar_lea.vmem %s967_s5, %s681_s14  ;;  %vm523_vm2 = vcmp.lt.s32.totalorder %v521_v19, 40  ;;  %s333_s29 = scalar_lea.vmem %s968_s6, %s681_s14 }
  0x18   : > { %713 = vmatprep.mubr.msk.f32.mxu0 %vm348_vm0, %v335_v12  ;;  %724 = vmatprep.mubr.msk.f32.mxu1 %vm348_vm0, %v335_v12 }
  0x19   : > { %714 = vmatmul.mubr.msk.f32.vlgmr.msra.gmra.mrb[0].mxu0 %vm348_vm0, %v336_v13  ;;  %725 = vmatmul.mubr.msk.f32.vlgmr.msra.gmra.mrb[0].mxu1 %vm348_vm0, %v336_v13 }
  0xec   : > { %v715_v22 = vpop.f32.mrb[0].mxu0  ;;  %v726_v24 = vpop.f32.mrb[0].mxu1 }
  0xed   : > { %v427_v23 = vadd.f32 %v715_v22, %v684_v20  ;;  %v421_v25 = vpop.f32.mrb[1].mxu0  ;;  %v513_v26 = vadd.f32 %v726_v24, %v687_v21  ;;  %v507_v28 = vpop.f32.mrb[1].mxu1 }
  0xee   : > { %v422_v27 = vadd.f32 %v684_v20, %v421_v25  ;;  %v508_v30 = vadd.f32 %v687_v21, %v507_v28 }
  0xef   : > { %v526_v29 = vsel %vm524_vm1, %v427_v23, 0.0  ;;  %v528_v31 = vsel %vm524_vm1, %v513_v26, 0.0 }
  0xf0   : > { %530 = vst.msk [vmem:[%s323_s20 + $0x8] sm:$0xff] %vm348_vm0, %v526_v29  ;;  %v525_v32 = vsel %vm523_vm2, %v422_v27, 0.0  ;;  %532 = vst.msk [vmem:[%s333_s29 + $0x8] sm:$0xff] %vm348_vm0, %v528_v31  ;;  %v527_v33 = vsel %vm523_vm2, %v508_v30, 0.0 }
  0xf1   : > { %529 = vst.msk [vmem:[%s323_s20] sm:$0xff] %vm348_vm0, %v525_v32  ;;  %531 = vst.msk [vmem:[%s333_s29] sm:$0xff] %vm348_vm0, %v527_v33 }
  0xf2 PF: > { %s17_s25 = sadd.s32 1, %s823_s25   ;;  %s969_s21 = smov %s815_s23 }
  0xf3   : > { %p14_p8 = scmp.ge.s32.totalorder %s17_s25, 8   ;;  %s970_s22 = smov %s819_s24 }
  0xf4   : > { %s971_s23 = smov %s974_s26  ;;  %s972_s24 = smov %s978_s27 }
  0xf5   :  { %16 = sbr.rel (!%p14_p8) target bundleno = 3 (0x3), region = 82 }

// kernel: tpu_custom_call.1
= control target key start
LH: loop header
LB: loop body
LE: loop exit
PB: predicated region body
PF: predicated region fallthrough
CT: control target
= control target key end

     0   :  { %s860_s21 = smov 0   ;;  %s862_s22 = smov 0   ;;  %s962_s0 = inlined_call_operand.vmem [shape: f32[2,40,32], index: 0, kind: input, shape index: {}]   ;;  %s963_s1 = inlined_call_operand.vmem [shape: f32[32,32], index: 1, kind: input, shape index: {}]   ;;  %s964_s2 = inlined_call_operand.vmem [shape: f32[1,32], index: 2, kind: input, shape index: {}]   ;;  %s965_s3 = inlined_call_operand.vmem [shape: f32[32,32], index: 3, kind: input, shape index: {}]   ;;  %s966_s4 = inlined_call_operand.vmem [shape: f32[1,32], index: 4, kind: input, shape index: {}]   ;;  %s967_s5 = inlined_call_operand.vmem [shape: f32[2,48,32], index: 5, kind: output, shape index: {0}]   ;;  %s968_s6 = inlined_call_operand.vmem [shape: f32[2,48,32], index: 6, kind: output, shape index: {1}]  }
   0x1   :  { %s864_s23 = smov 0   ;;  %s866_s24 = smov 0  }
   0x2   :  { %s868_s25 = smov 0  }
   0x3 LB: > { %s26_s26 = sadd.s32 1, %s815_s23  ;;  %s29_s27 = sadd.s32 1, %s819_s24  ;;  %s823_s25 = sphi %s868_s25, %s17_s25   ;;  %s819_s24 = sphi %s866_s24, %s972_s24   ;;  %s815_s23 = sphi %s864_s23, %s971_s23   ;;  %s811_s22 = sphi %s862_s22, %s970_s22   ;;  %s807_s21 = sphi %s860_s21, %s969_s21  }
   0x4   : > { %p27_p0 = scmp.ge.s32.totalorder %s26_s26, 3  ;;  %p677_p1 = scmp.ge.s32.totalorder %s823_s25, 1 }
   0x5   : > { %p246_p2 = scmp.lt.s32.totalorder %s823_s25, 7 }
   0x6   : > { %s974_s26 = smov (%p27_p0, %s26_s26), 0  ;;  %s976_s27 = smov (!%p27_p0, %s29_s27), %s819_s24 }
   0x7   : > { %p247_p3 = pnand %p677_p1, %p246_p2  ;;  %p31_p4 = scmp.ge.s32.totalorder %s976_s27, 2 }
   0x8   : > { %v337_v0 = vld [vmem:[%s963_s1] sm:$0xff] (!%p247_p3)  ;;  %v338_v1 = vld [vmem:[%s963_s1 + $0x8] sm:$0xff] (!%p247_p3)  ;;  %s902_s10 = sshll.u32 (!%p247_p3), %s807_s21, 1  ;;  %p302_p5 = scmp.lt.s32.totalorder (!%p247_p3), %s811_s22, 1  ;;  %v339_v5 = vld [vmem:[%s963_s1 + $0x10] sm:$0xff] (!%p247_p3)  ;;  %vm348_vm0 = vcmask (!%p247_p3), 261120   ;;  %v517_v14 = vlaneseq (!%p247_p3) }
   0x9   : > { %s978_s27 = smov (%p31_p4, %s976_s27), 0  ;;  %250 = sbr.rel (%p247_p3) target bundleno = 242 (0xf2), region = 40 }
   0xa   : > { %v430_v2 = vld [vmem:[%s965_s3] sm:$0xff] (!%p247_p3)  ;;  %v727_v3 = vpack.c.bf16 (!%p247_p3), %v338_v1, %v337_v0  ;;  %v431_v4 = vld [vmem:[%s965_s3 + $0x8] sm:$0xff] (!%p247_p3)  ;;  %v340_v6 = vld [vmem:[%s963_s1 + $0x18] sm:$0xff] (!%p247_p3)  ;;  %p304_p6 = scmp.lt.s32.totalorder (!%p247_p3), %s902_s10, 4  ;;  %p318_p7 = scmp.lt.s32.totalorder (!%p247_p3), %s902_s10, 5  ;;  %v518_v15 = vshrl.u32 (!%p247_p3), %v517_v14, 7 }
   0xb   : > { %v735_v7 = vpack.c.bf16 (!%p247_p3), %v431_v4, %v430_v2  ;;  %v731_v8 = vpack.c.bf16 (!%p247_p3), %v340_v6, %v339_v5  ;;  %v432_v9 = vld [vmem:[%s965_s3 + $0x10] sm:$0xff] (!%p247_p3)  ;;  %v433_v10 = vld [vmem:[%s965_s3 + $0x18] sm:$0xff] (!%p247_p3)  ;;  %v684_v20 = vld [vmem:[%s964_s2] ss:$0 sm:$0xff] (!%p247_p3) }
   0xc   : > { %728 = vmatprep.subr.bf16.mxu0 (!%p247_p3), %v727_v3  ;;  %v739_v11 = vpack.c.bf16 (!%p247_p3), %v433_v10, %v432_v9  ;;  %v519_v16 = vadd.s32 (!%p247_p3), 8, %v518_v15  ;;  %v687_v21 = vld [vmem:[%s966_s4] ss:$0 sm:$0xff] (!%p247_p3) }
   0xd   : > { %736 = vmatprep.subr.bf16.mxu1 (!%p247_p3), %v735_v7  ;;  %730 = vmatpush3.bf16.msra.mxu0 (!%p247_p3), %v727_v3 }
   0xe   : > { %738 = vmatpush3.bf16.msra.mxu1 (!%p247_p3), %v735_v7  ;;  %732 = vmatprep.subr.bf16.mxu0 (!%p247_p3), %v731_v8 }
   0xf   : > { %740 = vmatprep.subr.bf16.mxu1 (!%p247_p3), %v739_v11 }
  0x10   : > { %s980_s22 = smov (!%p302_p5, %s811_s22), 1 }
  0x11   : > { %s305_s28 = scalar_select %p304_p6, %s902_s10, 4  ;;  %734 = vmatpush3.bf16.msra.mxu0 %v731_v8 }
  0x12   : > { %s743_s29 = smul.u32 5, %s980_s22  ;;  %742 = vmatpush3.bf16.msra.mxu1 %v739_v11  ;;  %s982_s10 = smov (!%p318_p7, %s902_s10), 5 }
  0x13   : > { %s744_s8 = smul.u32 6, %s980_s22  ;;  %s690_s22 = sshll.u32 %s807_s21, 4 }
  0x14   : > { %s307_s30 = sadd.s32 %s743_s29, %s305_s28  ;;  %v520_v17 = vstv %s690_s22 }
  0x15   : > { %s679_s7 = sshll.u32 %s307_s30, 3  ;;  %s321_s13 = sadd.s32 %s744_s8, %s982_s10  ;;  %v522_v18 = vadd.s32 %v520_v17, %v519_v16  ;;  %v521_v19 = vadd.s32 %v520_v17, %v518_v15 }
  0x16   : > { %s309_s12 = scalar_lea.vmem %s962_s0, %s679_s7  ;;  %s681_s14 = sshll.u32 %s321_s13, 3 }
  0x17   : > { %v335_v12 = vld [vmem:[%s309_s12] sm:$0xff]  ;;  %v336_v13 = vld [vmem:[%s309_s12 + $0x8] sm:$0xff]  ;;  %vm524_vm1 = vcmp.lt.s32.totalorder %v522_v18, 40  ;;  %s323_s20 = scalar_lea.vmem %s967_s5, %s681_s14  ;;  %vm523_vm2 = vcmp.lt.s32.totalorder %v521_v19, 40  ;;  %s333_s29 = scalar_lea.vmem %s968_s6, %s681_s14 }
  0x18   : > { %713 = vmatprep.mubr.msk.f32.mxu0 %vm348_vm0, %v335_v12  ;;  %724 = vmatprep.mubr.msk.f32.mxu1 %vm348_vm0, %v335_v12 }
  0x19   : > { %714 = vmatmul.mubr.msk.f32.vlgmr.msra.gmra.mrb[0].mxu0 %vm348_vm0, %v336_v13  ;;  %725 = vmatmul.mubr.msk.f32.vlgmr.msra.gmra.mrb[0].mxu1 %vm348_vm0, %v336_v13 }
  0xec   : > { %v715_v22 = vpop.f32.mrb[0].mxu0  ;;  %v726_v24 = vpop.f32.mrb[0].mxu1 }
  0xed   : > { %v427_v23 = vadd.f32 %v715_v22, %v684_v20  ;;  %v421_v25 = vpop.f32.mrb[1].mxu0  ;;  %v513_v26 = vadd.f32 %v726_v24, %v687_v21  ;;  %v507_v28 = vpop.f32.mrb[1].mxu1 }
  0xee   : > { %v422_v27 = vadd.f32 %v684_v20, %v421_v25  ;;  %v508_v30 = vadd.f32 %v687_v21, %v507_v28 }
  0xef   : > { %v526_v29 = vsel %vm524_vm1, %v427_v23, 0.0  ;;  %v528_v31 = vsel %vm524_vm1, %v513_v26, 0.0 }
  0xf0   : > { %530 = vst.msk [vmem:[%s323_s20 + $0x8] sm:$0xff] %vm348_vm0, %v526_v29  ;;  %v525_v32 = vsel %vm523_vm2, %v422_v27, 0.0  ;;  %532 = vst.msk [vmem:[%s333_s29 + $0x8] sm:$0xff] %vm348_vm0, %v528_v31  ;;  %v527_v33 = vsel %vm523_vm2, %v508_v30, 0.0 }
  0xf1   : > { %529 = vst.msk [vmem:[%s323_s20] sm:$0xff] %vm348_vm0, %v525_v32  ;;  %531 = vst.msk [vmem:[%s333_s29] sm:$0xff] %vm348_vm0, %v527_v33 }
  0xf2 PF: > { %s17_s25 = sadd.s32 1, %s823_s25   ;;  %s969_s21 = smov %s815_s23 }
  0xf3   : > { %p14_p8 = scmp.ge.s32.totalorder %s17_s25, 8   ;;  %s970_s22 = smov %s819_s24 }
  0xf4   : > { %s971_s23 = smov %s974_s26  ;;  %s972_s24 = smov %s978_s27 }
  0xf5   :  { %16 = sbr.rel (!%p14_p8) target bundleno = 3 (0x3), region = 82 }

</bundles_post_ra>
